<compile_context>
chip_gen: v7x
topology: tpu7x:2x2x1
jax: 0.10.0
libtpu: 0.0.40
codegen_flags: <defaults>
</compile_context>

<pallas_src>
import functools

import jax
import jax.numpy as jnp
from jax.experimental import pallas as pl
from jax.experimental.pallas import tpu as pltpu

EPS = 1e-5


def _round_up(x, m):
    return (x + m - 1) // m * m


def _vmem_limit(working_set_bytes):
    # Generation-aware VMEM cap (v5e/v6e: 128 MiB physical, v7x: 64 MiB); keep headroom.
    try:
        cap = int(pltpu.get_tpu_info().vmem_capacity_bytes)
    except Exception:  # interpreter / unknown backend
        cap = 64 << 20
    hi = max(min(int(cap * 0.7), 96 << 20), 16 << 20)
    return int(min(max(int(working_set_bytes) + (4 << 20), 16 << 20), hi))


# --------------------------------------------------------------------------------------
# Pass 1a: folded-im2col conv + per-channel sum / sum-of-squares (stride-1 "same" convs)
# --------------------------------------------------------------------------------------
def _conv_stats_folded_kernel(x_ref, w_ref, mask_ref, conv_ref, sum_ref, ssq_ref,
                              *, kh, kw, row_stride):
    # x_ref:    (1, Cin_pad, L_in_pad)     flattened height-padded image (bf16)
    # w_ref:    (kh*kw, Cout_pad, Cin_pad) conv weights, resident across the grid (bf16)
    # mask_ref: (kw, L_out_pad)            width-padding masks, exact {0,1} in bf16
    # conv_ref: (1, Cout_pad, L_out_pad)   conv output tile (bf16), lane-dense
    # sum_ref:  (1, Cout_pad, 1)           per-core per-channel sum   accumulator (f32)
    # ssq_ref:  (1, Cout_pad, 1)           per-core per-channel sumsq accumulator (f32)
    @pl.when(pl.program_id(1) == 0)
    def _():
        sum_ref[...] = jnp.zeros_like(sum_ref)
        ssq_ref[...] = jnp.zeros_like(ssq_ref)

    l_out = conv_ref.shape[-1]
    xv = x_ref[0]                       # (Cin_pad, L_in_pad), read from HBM exactly once
    masks = mask_ref[...]               # (kw, L_out_pad)

    # kh*kw static lane-shifted matmuls, f32 MXU accumulation.  The width mask makes the
    # "wrapped" reads at row boundaries exactly 0, so every computed lane is either a real
    # output position or exactly 0 (padded tail) -> BN stats need no further masking.
    acc = jnp.zeros(conv_ref.shape[1:], jnp.float32)
    for i in range(kh):
        for j in range(kw):
            d = i * row_stride + j
            xs = xv[:, d:d + l_out] * masks[j:j + 1, :]
            acc = acc + jnp.dot(w_ref[i * kw + j], xs,
                                preferred_element_type=jnp.float32)

    conv_ref[0, :, :] = acc.astype(conv_ref.dtype)
    sum_ref[0, :, :] += jnp.sum(acc, axis=-1, keepdims=True)
    ssq_ref[0, :, :] += jnp.sum(acc * acc, axis=-1, keepdims=True)


# --------------------------------------------------------------------------------------
# Pass 1b: im2col-matmul fallback (strided / non-"same" convs)
# --------------------------------------------------------------------------------------
def _conv_stats_im2col_kernel(pt_ref, w_ref, conv_ref, sum_ref, ssq_ref):
    # pt_ref: (1, K_pad, HWo_pad) per-image patches (bf16); w_ref: (Cout_pad, K_pad) bf16.
    @pl.when(pl.program_id(1) == 0)
    def _():
        sum_ref[...] = jnp.zeros_like(sum_ref)
        ssq_ref[...] = jnp.zeros_like(ssq_ref)

    conv = jnp.dot(w_ref[...], pt_ref[0], preferred_element_type=jnp.float32)
    conv_ref[0, :, :] = conv.astype(conv_ref.dtype)
    sum_ref[0, :, :] += jnp.sum(conv, axis=-1, keepdims=True)
    ssq_ref[0, :, :] += jnp.sum(conv * conv, axis=-1, keepdims=True)


# --------------------------------------------------------------------------------------
# Pass 2: batch-norm apply, writes (N, Cout_pad, Ho*Wo_pad) directly (no transpose after)
# --------------------------------------------------------------------------------------
def _bn_apply_kernel(conv_ref, sum_ref, ssq_ref, gamma_ref, beta_ref, o_ref, *, inv_m):
    # All BN math in f32 (v5e has no bf16 VPU path); inv_m = 1 / (N*Ho*Wo), the real count.
    s = jnp.sum(sum_ref[...], axis=0)                 # combine per-core partials
    q = jnp.sum(ssq_ref[...], axis=0)
    mean = s * inv_m                                  # (Cout_pad, 1)
    var = jnp.maximum(q * inv_m - mean * mean, 0.0)   # guard f32 cancellation
    inv_std = jax.lax.rsqrt(var + EPS)
    scale = gamma_ref[...] * inv_std
    shift = beta_ref[...] - mean * scale
    x = conv_ref[0].astype(jnp.float32)               # (Cout_pad, L_out_pad)
    o_ref[0, :, :] = (x * scale + shift).astype(o_ref.dtype)


# --------------------------------------------------------------------------------------
# Host-side wrappers
# --------------------------------------------------------------------------------------
def _conv_stats_folded(x, weight, n, cin, h, w, k, p, cout, cout_pad, hw, hw_pad,
                       n_split, per_core, conv_dtype):
    cin_pad = _round_up(cin, 8)
    hp = h + 2 * p
    d_max = (k - 1) * w + (k - 1)
    l_in_pad = _round_up(hw_pad + d_max, 128)

    # Flattened height-padded activation, front-shifted by p zeros so every lane shift is
    # non-negative: x_ext[n, ci, p + r] = x_hpad[n, ci, r // W, r % W].
    xb = x.astype(jnp.bfloat16)
    xhp = jnp.pad(xb, ((0, 0), (0, 0), (p, p), (0, 0))).reshape(n, cin, hp * w)
    x_ext = jnp.pad(xhp, ((0, 0), (0, cin_pad - cin), (p, l_in_pad - p - hp * w)))

    # Width-padding masks: for kernel column j, lane u = ho*W + wo is valid iff
    # 0 <= wo + j - p < W (and u < Ho*Wo).  Exact {0,1} bf16, so the multiply is exact.
    u = jnp.arange(hw_pad)
    wo_idx = u % w
    valid_u = u < hw
    masks = jnp.stack(
        [(valid_u & (wo_idx + j - p >= 0) & (wo_idx + j - p < w)) for j in range(k)],
        axis=0).astype(jnp.bfloat16)                                  # (k, hw_pad)

    # Weights as (kh*kw, Cout_pad, Cin_pad): w_q[co, ci] = weight[co, ci, i, j], q=i*k+j.
    wq = jnp.pad(
        weight.astype(jnp.bfloat16).transpose(2, 3, 0, 1).reshape(k * k, cout, cin),
        ((0, 0), (0, cout_pad - cout), (0, cin_pad - cin)))

    conv_bytes = jnp.dtype(conv_dtype).itemsize
    ws1 = (2 * cin_pad * l_in_pad * 2             # x block, double-buffered
           + 2 * cout_pad * hw_pad * conv_bytes   # conv block, double-buffered
           + 2 * k * k * cout_pad * cin_pad * 2   # weights (TODO(synk): pl.Buffered(1))
           + 2 * k * hw_pad * 2                   # masks
           + cout_pad * hw_pad * 4                # f32 accumulator value
           + 2 * cin_pad * hw_pad * 2             # shifted-slice temporaries
           + 8 * cout_pad * 4)

    return pl.pallas_call(
        functools.partial(_conv_stats_folded_kernel, kh=k, kw=k, row_stride=w),
        out_shape=(
            jax.ShapeDtypeStruct((n, cout_pad, hw_pad), conv_dtype),
            jax.ShapeDtypeStruct((n_split, cout_pad, 1), jnp.float32),
            jax.ShapeDtypeStruct((n_split, cout_pad, 1), jnp.float32),
        ),
        grid=(n_split, per_core),
        in_specs=[
            pl.BlockSpec((1, cin_pad, l_in_pad), lambda c, i: (c * per_core + i, 0, 0)),
            pl.BlockSpec((k * k, cout_pad, cin_pad), lambda c, i: (0, 0, 0)),
            pl.BlockSpec((k, hw_pad), lambda c, i: (0, 0)),
        ],
        out_specs=(
            pl.BlockSpec((1, cout_pad, hw_pad), lambda c, i: (c * per_core + i, 0, 0)),
            pl.BlockSpec((1, cout_pad, 1), lambda c, i: (c, 0, 0)),
            pl.BlockSpec((1, cout_pad, 1), lambda c, i: (c, 0, 0)),
        ),
        compiler_params=pltpu.CompilerParams(
            dimension_semantics=("parallel", "arbitrary"),
            vmem_limit_bytes=_vmem_limit(ws1),
        ),
        cost_estimate=pl.CostEstimate(
            flops=2 * n * k * k * cout_pad * cin_pad * hw_pad,
            transcendentals=0,
            bytes_accessed=n * (cin_pad * l_in_pad * 2 + cout_pad * hw_pad * conv_bytes),
        ),
    )(x_ext, wq, masks)


def _conv_stats_im2col(x, weight, n, cin, h, w, k, s, p, ho, wo, cout, cout_pad, hw,
                       hw_pad, n_split, per_core, conv_dtype):
    # Fallback path for strided / non-"same" convs (ResNet's stride-2 blocks).
    # TODO(synk): fold the strided im2col into the kernel too (strided halo DMA).
    kk = cin * k * k
    k_pad = _round_up(kk, 8)

    xb = x.astype(jnp.bfloat16)
    xp = jnp.pad(xb, ((0, 0), (0, 0), (p, p), (p, p)))
    cols = [xp[:, :, i:i + s * ho:s, j:j + s * wo:s]
            for i in range(k) for j in range(k)]             # each (N, Cin, Ho, Wo)
    pt = jnp.stack(cols, axis=2).reshape(n, kk, hw)          # K ordering (ci, i, j)
    pt = jnp.pad(pt, ((0, 0), (0, k_pad - kk), (0, hw_pad - hw)))

    wm = jnp.pad(weight.reshape(cout, kk).astype(jnp.bfloat16),
                 ((0, cout_pad - cout), (0, k_pad - kk)))

    conv_bytes = jnp.dtype(conv_dtype).itemsize
    ws1 = (2 * k_pad * hw_pad * 2 + 2 * cout_pad * hw_pad * conv_bytes
           + 2 * cout_pad * k_pad * 2 + cout_pad * hw_pad * 4 + 8 * cout_pad * 4)

    return pl.pallas_call(
        _conv_stats_im2col_kernel,
        out_shape=(
            jax.ShapeDtypeStruct((n, cout_pad, hw_pad), conv_dtype),
            jax.ShapeDtypeStruct((n_split, cout_pad, 1), jnp.float32),
            jax.ShapeDtypeStruct((n_split, cout_pad, 1), jnp.float32),
        ),
        grid=(n_split, per_core),
        in_specs=[
            pl.BlockSpec((1, k_pad, hw_pad), lambda c, i: (c * per_core + i, 0, 0)),
            pl.BlockSpec((cout_pad, k_pad), lambda c, i: (0, 0)),
        ],
        out_specs=(
            pl.BlockSpec((1, cout_pad, hw_pad), lambda c, i: (c * per_core + i, 0, 0)),
            pl.BlockSpec((1, cout_pad, 1), lambda c, i: (c, 0, 0)),
            pl.BlockSpec((1, cout_pad, 1), lambda c, i: (c, 0, 0)),
        ),
        compiler_params=pltpu.CompilerParams(
            dimension_semantics=("parallel", "arbitrary"),
            vmem_limit_bytes=_vmem_limit(ws1),
        ),
        cost_estimate=pl.CostEstimate(
            flops=2 * n * k_pad * cout_pad * hw_pad,
            transcendentals=0,
            bytes_accessed=n * (k_pad * hw_pad * 2 + cout_pad * hw_pad * conv_bytes),
        ),
    )(pt, wm)


@functools.partial(jax.jit, static_argnames=("kernel_size", "stride", "padding",
                                              "conv_dtype", "out_dtype"))
def conv_block(x_nchw, weight, bias, gamma, beta, *, kernel_size, stride, padding,
               conv_dtype=jnp.bfloat16, out_dtype=jnp.float32):
    """Forward pass of ConvBlock. x_nchw: (N, Cin, H, W); returns (N, Cout, Ho, Wo)."""
    del bias  # cancelled exactly by training-mode BN mean-centering
    n, cin, h, w = x_nchw.shape
    cout = weight.shape[0]
    k, s, p = kernel_size, stride, padding
    ho = (h + 2 * p - k) // s + 1
    wo = (w + 2 * p - k) // s + 1
    hw = ho * wo
    m_real = n * hw

    cout_pad = _round_up(cout, 16)   # bf16 sublane packing
    hw_pad = _round_up(hw, 128)      # lane-dense columns
    n_split = 2 if (n % 2 == 0 and n >= 2) else 1   # per-TensorCore stats partials (v7x)
    per_core = n // n_split

    g_col = jnp.pad(gamma.astype(jnp.float32), (0, cout_pad - cout)).reshape(cout_pad, 1)
    b_col = jnp.pad(beta.astype(jnp.float32), (0, cout_pad - cout)).reshape(cout_pad, 1)

    # ---- Pass 1: conv + global per-channel sum / sum-of-squares ----
    if s == 1 and 2 * p == k - 1:    # stride-1 "same" conv: in-kernel (folded) im2col
        conv_t, ch_sum, ch_ssq = _conv_stats_folded(
            x_nchw, weight, n, cin, h, w, k, p, cout, cout_pad, hw, hw_pad,
            n_split, per_core, conv_dtype)
    else:
        conv_t, ch_sum, ch_ssq = _conv_stats_im2col(
            x_nchw, weight, n, cin, h, w, k, s, p, ho, wo, cout, cout_pad, hw, hw_pad,
            n_split, per_core, conv_dtype)

    # ---- Pass 2: normalize / scale / shift, written directly as (N, Cout_pad, HW_pad) ----
    ws2 = (2 * cout_pad * hw_pad
           * (jnp.dtype(conv_dtype).itemsize + jnp.dtype(out_dtype).itemsize)
           + cout_pad * hw_pad * 4 + 8 * cout_pad * 4)
    out_t = pl.pallas_call(
        functools.partial(_bn_apply_kernel, inv_m=1.0 / m_real),
        out_shape=jax.ShapeDtypeStruct((n, cout_pad, hw_pad), out_dtype),
        grid=(n,),
        in_specs=[
            pl.BlockSpec((1, cout_pad, hw_pad), lambda i: (i, 0, 0)),
            pl.BlockSpec((n_split, cout_pad, 1), lambda i: (0, 0, 0)),
            pl.BlockSpec((n_split, cout_pad, 1), lambda i: (0, 0, 0)),
            pl.BlockSpec((cout_pad, 1), lambda i: (0, 0)),
            pl.BlockSpec((cout_pad, 1), lambda i: (0, 0)),
        ],
        out_specs=pl.BlockSpec((1, cout_pad, hw_pad), lambda i: (i, 0, 0)),
        compiler_params=pltpu.CompilerParams(
            dimension_semantics=("parallel",),
            vmem_limit_bytes=_vmem_limit(ws2),
        ),
        cost_estimate=pl.CostEstimate(
            flops=4 * n * cout_pad * hw_pad,
            transcendentals=n * cout_pad,
            bytes_accessed=n * cout_pad * hw_pad
            * (jnp.dtype(conv_dtype).itemsize + jnp.dtype(out_dtype).itemsize),
        ),
    )(conv_t, ch_sum, ch_ssq, g_col, b_col)

    # Slice off padding; free when cout == cout_pad and hw == hw_pad (typical ResNet shapes).
    return out_t[:, :cout, :hw].reshape(n, cout, ho, wo)


def _reference(x, weight, bias, gamma, beta, stride, padding):
    # Plain-JAX reference: f32 conv (NCHW) + training-mode batchnorm (module semantics).
    conv = jax.lax.conv_general_dilated(
        x.astype(jnp.float32), weight.astype(jnp.float32),
        window_strides=(stride, stride),
        padding=[(padding, padding), (padding, padding)],
        dimension_numbers=("NCHW", "OIHW", "NCHW"),
    ) + bias.reshape(1, -1, 1, 1).astype(jnp.float32)
    mean = conv.mean(axis=(0, 2, 3), keepdims=True)
    var = ((conv - mean) ** 2).mean(axis=(0, 2, 3), keepdims=True)
    return (conv - mean) / jnp.sqrt(var + EPS) * gamma.reshape(1, -1, 1, 1) \
        + beta.reshape(1, -1, 1, 1)


if __name__ == "__main__":
    # ConvBlock(in_channels=4, out_channels=8, kernel_size=3, ...)
    in_channels, out_channels, kernel_size = 4, 8, 3
    N, H, W = 4, 16, 16

    key = jax.random.PRNGKey(0)
    kx, kw_, kb = jax.random.split(key, 3)
    x = jax.random.normal(kx, (N, in_channels, H, W), dtype=jnp.float32)

    # Deterministic parameter init (shapes as in nn.Conv2d / nn.BatchNorm2d __init__).
    fan_in = in_channels * kernel_size * kernel_size
    bound = 1.0 / (fan_in ** 0.5)
    weight = jax.random.uniform(
        kw_, (out_channels, in_channels, kernel_size, kernel_size),
        minval=-bound, maxval=bound, dtype=jnp.float32)
    bias = jax.random.uniform(kb, (out_channels,), minval=-bound, maxval=bound,
                              dtype=jnp.float32)
    gamma = jnp.ones((out_channels,), jnp.float32)   # BN weight default
    beta = jnp.zeros((out_channels,), jnp.float32)   # BN bias default

    x_q = x.astype(jnp.bfloat16).astype(jnp.float32)
    w_q = weight.astype(jnp.bfloat16).astype(jnp.float32)

    # --- stride 1 / padding 1: folded in-kernel-im2col path (grid (2, 2)) ---
    out1 = jax.block_until_ready(conv_block(x, weight, bias, gamma, beta,
                                            kernel_size=3, stride=1, padding=1))
    assert out1.shape == (N, out_channels, H, W)
    ref1_q = _reference(x_q, w_q, bias, gamma, beta, 1, 1)   # isolates kernel/BN math
    assert jnp.allclose(out1, ref1_q, atol=2e-2, rtol=2e-2), \
        float(jnp.max(jnp.abs(out1 - ref1_q)))
    ref1 = _reference(x, weight, bias, gamma, beta, 1, 1)    # full-f32 module semantics
    assert jnp.allclose(out1, ref1, atol=5e-2, rtol=5e-2), \
        float(jnp.max(jnp.abs(out1 - ref1)))

    # --- stride 2: per-image im2col fallback path ---
    out2 = jax.block_until_ready(conv_block(x, weight, bias, gamma, beta,
                                            kernel_size=3, stride=2, padding=1))
    assert out2.shape == (N, out_channels, H // 2, W // 2)
    ref2_q = _reference(x_q, w_q, bias, gamma, beta, 2, 1)
    assert jnp.allclose(out2, ref2_q, atol=2e-2, rtol=2e-2), \
        float(jnp.max(jnp.abs(out2 - ref2_q)))
    ref2 = _reference(x, weight, bias, gamma, beta, 2, 1)
    assert jnp.allclose(out2, ref2, atol=5e-2, rtol=5e-2), \
        float(jnp.max(jnp.abs(out2 - ref2)))

    print("KERNEL_OK")
</pallas_src>

<mosaic_0001>
module attributes {stable_mosaic.version = 11 : i64} {
  func.func @_conv_stats_folded_kernel(%arg0: i32, %arg1: i32, %arg2: memref<1x8x384xbf16, #tpu.memory_space<vmem>>, %arg3: memref<9x16x8xbf16, #tpu.memory_space<vmem>>, %arg4: memref<3x256xbf16, #tpu.memory_space<vmem>>, %arg5: memref<1x16x256xbf16, #tpu.memory_space<vmem>>, %arg6: memref<1x16x1xf32, #tpu.memory_space<vmem>>, %arg7: memref<1x16x1xf32, #tpu.memory_space<vmem>>) attributes {dimension_semantics = [#tpu.dimension_semantics<parallel>, #tpu.dimension_semantics<arbitrary>], iteration_bounds = array<i64: 2, 2>, scalar_prefetch = 0 : i64, scratch_operands = 0 : i64, tpu.core_type = #tpu.core_type<tc>, window_params = [{transform_indices = @transform_0, window_bounds = array<i64: 1, 8, 384>}, {pipeline_mode = #tpu.pipeline_mode<synchronous>, transform_indices = @transform_1, window_bounds = array<i64: 9, 16, 8>}, {pipeline_mode = #tpu.pipeline_mode<synchronous>, transform_indices = @transform_2, window_bounds = array<i64: 3, 256>}, {transform_indices = @transform_3, window_bounds = array<i64: 1, 16, 256>}, {transform_indices = @transform_4, window_bounds = array<i64: 1, 16, 1>}, {transform_indices = @transform_5, window_bounds = array<i64: 1, 16, 1>}]} {
    %c0_i32 = arith.constant 0 : i32
    %0 = arith.cmpi eq, %arg1, %c0_i32 : i32
    %1 = arith.extui %0 : i1 to i32
    %c0_i32_0 = arith.constant 0 : i32
    %2 = arith.cmpi ne, %1, %c0_i32_0 : i32
    scf.if %2 {
      %cst_50 = arith.constant 0.000000e+00 : f32
      %100 = vector.broadcast %cst_50 : f32 to vector<1x16x1xf32>
      %c0_51 = arith.constant 0 : index
      %c0_52 = arith.constant 0 : index
      %c0_53 = arith.constant 0 : index
      %101 = vector.load %arg6[%c0_51, %c0_52, %c0_53] : memref<1x16x1xf32, #tpu.memory_space<vmem>>, vector<1x16x1xf32>
      tpu.vector_store %arg6[%c0_51, %c0_52, %c0_53], %100 {strides = array<i32>} : memref<1x16x1xf32, #tpu.memory_space<vmem>>, vector<1x16x1xf32>,
      %cst_54 = arith.constant 0.000000e+00 : f32
      %102 = vector.broadcast %cst_54 : f32 to vector<1x16x1xf32>
      %c0_55 = arith.constant 0 : index
      %c0_56 = arith.constant 0 : index
      %c0_57 = arith.constant 0 : index
      %103 = vector.load %arg7[%c0_55, %c0_56, %c0_57] : memref<1x16x1xf32, #tpu.memory_space<vmem>>, vector<1x16x1xf32>
      tpu.vector_store %arg7[%c0_55, %c0_56, %c0_57], %102 {strides = array<i32>} : memref<1x16x1xf32, #tpu.memory_space<vmem>>, vector<1x16x1xf32>,
    } else {
    }
    %c0 = arith.constant 0 : index
    %c0_1 = arith.constant 0 : index
    %c0_2 = arith.constant 0 : index
    %3 = vector.load %arg2[%c0, %c0_1, %c0_2] : memref<1x8x384xbf16, #tpu.memory_space<vmem>>, vector<1x8x384xbf16>
    %4 = vector.shape_cast %3 : vector<1x8x384xbf16> to vector<8x384xbf16>
    %c0_3 = arith.constant 0 : index
    %c0_4 = arith.constant 0 : index
    %5 = vector.load %arg4[%c0_3, %c0_4] : memref<3x256xbf16, #tpu.memory_space<vmem>>, vector<3x256xbf16>
    %cst = arith.constant 0.000000e+00 : f32
    %6 = vector.broadcast %cst : f32 to vector<16x256xf32>
    %7 = vector.extract_strided_slice %4 {offsets = [0, 0], sizes = [8, 256], strides = [1, 1]} : vector<8x384xbf16> to vector<8x256xbf16>
    %8 = vector.extract_strided_slice %5 {offsets = [0, 0], sizes = [1, 256], strides = [1, 1]} : vector<3x256xbf16> to vector<1x256xbf16>
    %9 = vector.broadcast %8 : vector<1x256xbf16> to vector<8x256xbf16>
    %10 = arith.mulf %7, %9 : vector<8x256xbf16>
    %c0_5 = arith.constant 0 : index
    %c0_6 = arith.constant 0 : index
    %c0_7 = arith.constant 0 : index
    %11 = vector.load %arg3[%c0_5, %c0_6, %c0_7] : memref<9x16x8xbf16, #tpu.memory_space<vmem>>, vector<1x16x8xbf16>
    %12 = vector.shape_cast %11 : vector<1x16x8xbf16> to vector<16x8xbf16>
    %cst_8 = arith.constant dense<0.000000e+00> : vector<16x256xf32>
    %13 = tpu.matmul %12, %10, %cst_8 {dimension_numbers = #tpu.dot_dimension_numbers<[1], [0], [0], [1], [0, 0, 1, 1], [], []>} : vector<16x8xbf16>, vector<8x256xbf16>, vector<16x256xf32> -> vector<16x256xf32>
    %14 = arith.addf %6, %13 : vector<16x256xf32>
    %15 = vector.extract_strided_slice %4 {offsets = [0, 1], sizes = [8, 256], strides = [1, 1]} : vector<8x384xbf16> to vector<8x256xbf16>
    %16 = vector.extract_strided_slice %5 {offsets = [1, 0], sizes = [1, 256], strides = [1, 1]} : vector<3x256xbf16> to vector<1x256xbf16>
    %17 = vector.broadcast %16 : vector<1x256xbf16> to vector<8x256xbf16>
    %18 = arith.mulf %15, %17 : vector<8x256xbf16>
    %c1 = arith.constant 1 : index
    %c0_9 = arith.constant 0 : index
    %c0_10 = arith.constant 0 : index
    %19 = vector.load %arg3[%c1, %c0_9, %c0_10] : memref<9x16x8xbf16, #tpu.memory_space<vmem>>, vector<1x16x8xbf16>
    %20 = vector.shape_cast %19 : vector<1x16x8xbf16> to vector<16x8xbf16>
    %cst_11 = arith.constant dense<0.000000e+00> : vector<16x256xf32>
    %21 = tpu.matmul %20, %18, %cst_11 {dimension_numbers = #tpu.dot_dimension_numbers<[1], [0], [0], [1], [0, 0, 1, 1], [], []>} : vector<16x8xbf16>, vector<8x256xbf16>, vector<16x256xf32> -> vector<16x256xf32>
    %22 = arith.addf %14, %21 : vector<16x256xf32>
    %23 = vector.extract_strided_slice %4 {offsets = [0, 2], sizes = [8, 256], strides = [1, 1]} : vector<8x384xbf16> to vector<8x256xbf16>
    %24 = vector.extract_strided_slice %5 {offsets = [2, 0], sizes = [1, 256], strides = [1, 1]} : vector<3x256xbf16> to vector<1x256xbf16>
    %25 = vector.broadcast %24 : vector<1x256xbf16> to vector<8x256xbf16>
    %26 = arith.mulf %23, %25 : vector<8x256xbf16>
    %c2 = arith.constant 2 : index
    %c0_12 = arith.constant 0 : index
    %c0_13 = arith.constant 0 : index
    %27 = vector.load %arg3[%c2, %c0_12, %c0_13] : memref<9x16x8xbf16, #tpu.memory_space<vmem>>, vector<1x16x8xbf16>
    %28 = vector.shape_cast %27 : vector<1x16x8xbf16> to vector<16x8xbf16>
    %cst_14 = arith.constant dense<0.000000e+00> : vector<16x256xf32>
    %29 = tpu.matmul %28, %26, %cst_14 {dimension_numbers = #tpu.dot_dimension_numbers<[1], [0], [0], [1], [0, 0, 1, 1], [], []>} : vector<16x8xbf16>, vector<8x256xbf16>, vector<16x256xf32> -> vector<16x256xf32>
    %30 = arith.addf %22, %29 : vector<16x256xf32>
    %31 = vector.extract_strided_slice %4 {offsets = [0, 16], sizes = [8, 256], strides = [1, 1]} : vector<8x384xbf16> to vector<8x256xbf16>
    %32 = vector.extract_strided_slice %5 {offsets = [0, 0], sizes = [1, 256], strides = [1, 1]} : vector<3x256xbf16> to vector<1x256xbf16>
    %33 = vector.broadcast %32 : vector<1x256xbf16> to vector<8x256xbf16>
    %34 = arith.mulf %31, %33 : vector<8x256xbf16>
    %c3 = arith.constant 3 : index
    %c0_15 = arith.constant 0 : index
    %c0_16 = arith.constant 0 : index
    %35 = vector.load %arg3[%c3, %c0_15, %c0_16] : memref<9x16x8xbf16, #tpu.memory_space<vmem>>, vector<1x16x8xbf16>
    %36 = vector.shape_cast %35 : vector<1x16x8xbf16> to vector<16x8xbf16>
    %cst_17 = arith.constant dense<0.000000e+00> : vector<16x256xf32>
    %37 = tpu.matmul %36, %34, %cst_17 {dimension_numbers = #tpu.dot_dimension_numbers<[1], [0], [0], [1], [0, 0, 1, 1], [], []>} : vector<16x8xbf16>, vector<8x256xbf16>, vector<16x256xf32> -> vector<16x256xf32>
    %38 = arith.addf %30, %37 : vector<16x256xf32>
    %39 = vector.extract_strided_slice %4 {offsets = [0, 17], sizes = [8, 256], strides = [1, 1]} : vector<8x384xbf16> to vector<8x256xbf16>
    %40 = vector.extract_strided_slice %5 {offsets = [1, 0], sizes = [1, 256], strides = [1, 1]} : vector<3x256xbf16> to vector<1x256xbf16>
    %41 = vector.broadcast %40 : vector<1x256xbf16> to vector<8x256xbf16>
    %42 = arith.mulf %39, %41 : vector<8x256xbf16>
    %c4 = arith.constant 4 : index
    %c0_18 = arith.constant 0 : index
    %c0_19 = arith.constant 0 : index
    %43 = vector.load %arg3[%c4, %c0_18, %c0_19] : memref<9x16x8xbf16, #tpu.memory_space<vmem>>, vector<1x16x8xbf16>
    %44 = vector.shape_cast %43 : vector<1x16x8xbf16> to vector<16x8xbf16>
    %cst_20 = arith.constant dense<0.000000e+00> : vector<16x256xf32>
    %45 = tpu.matmul %44, %42, %cst_20 {dimension_numbers = #tpu.dot_dimension_numbers<[1], [0], [0], [1], [0, 0, 1, 1], [], []>} : vector<16x8xbf16>, vector<8x256xbf16>, vector<16x256xf32> -> vector<16x256xf32>
    %46 = arith.addf %38, %45 : vector<16x256xf32>
    %47 = vector.extract_strided_slice %4 {offsets = [0, 18], sizes = [8, 256], strides = [1, 1]} : vector<8x384xbf16> to vector<8x256xbf16>
    %48 = vector.extract_strided_slice %5 {offsets = [2, 0], sizes = [1, 256], strides = [1, 1]} : vector<3x256xbf16> to vector<1x256xbf16>
    %49 = vector.broadcast %48 : vector<1x256xbf16> to vector<8x256xbf16>
    %50 = arith.mulf %47, %49 : vector<8x256xbf16>
    %c5 = arith.constant 5 : index
    %c0_21 = arith.constant 0 : index
    %c0_22 = arith.constant 0 : index
    %51 = vector.load %arg3[%c5, %c0_21, %c0_22] : memref<9x16x8xbf16, #tpu.memory_space<vmem>>, vector<1x16x8xbf16>
    %52 = vector.shape_cast %51 : vector<1x16x8xbf16> to vector<16x8xbf16>
    %cst_23 = arith.constant dense<0.000000e+00> : vector<16x256xf32>
    %53 = tpu.matmul %52, %50, %cst_23 {dimension_numbers = #tpu.dot_dimension_numbers<[1], [0], [0], [1], [0, 0, 1, 1], [], []>} : vector<16x8xbf16>, vector<8x256xbf16>, vector<16x256xf32> -> vector<16x256xf32>
    %54 = arith.addf %46, %53 : vector<16x256xf32>
    %55 = vector.extract_strided_slice %4 {offsets = [0, 32], sizes = [8, 256], strides = [1, 1]} : vector<8x384xbf16> to vector<8x256xbf16>
    %56 = vector.extract_strided_slice %5 {offsets = [0, 0], sizes = [1, 256], strides = [1, 1]} : vector<3x256xbf16> to vector<1x256xbf16>
    %57 = vector.broadcast %56 : vector<1x256xbf16> to vector<8x256xbf16>
    %58 = arith.mulf %55, %57 : vector<8x256xbf16>
    %c6 = arith.constant 6 : index
    %c0_24 = arith.constant 0 : index
    %c0_25 = arith.constant 0 : index
    %59 = vector.load %arg3[%c6, %c0_24, %c0_25] : memref<9x16x8xbf16, #tpu.memory_space<vmem>>, vector<1x16x8xbf16>
    %60 = vector.shape_cast %59 : vector<1x16x8xbf16> to vector<16x8xbf16>
    %cst_26 = arith.constant dense<0.000000e+00> : vector<16x256xf32>
    %61 = tpu.matmul %60, %58, %cst_26 {dimension_numbers = #tpu.dot_dimension_numbers<[1], [0], [0], [1], [0, 0, 1, 1], [], []>} : vector<16x8xbf16>, vector<8x256xbf16>, vector<16x256xf32> -> vector<16x256xf32>
    %62 = arith.addf %54, %61 : vector<16x256xf32>
    %63 = vector.extract_strided_slice %4 {offsets = [0, 33], sizes = [8, 256], strides = [1, 1]} : vector<8x384xbf16> to vector<8x256xbf16>
    %64 = vector.extract_strided_slice %5 {offsets = [1, 0], sizes = [1, 256], strides = [1, 1]} : vector<3x256xbf16> to vector<1x256xbf16>
    %65 = vector.broadcast %64 : vector<1x256xbf16> to vector<8x256xbf16>
    %66 = arith.mulf %63, %65 : vector<8x256xbf16>
    %c7 = arith.constant 7 : index
    %c0_27 = arith.constant 0 : index
    %c0_28 = arith.constant 0 : index
    %67 = vector.load %arg3[%c7, %c0_27, %c0_28] : memref<9x16x8xbf16, #tpu.memory_space<vmem>>, vector<1x16x8xbf16>
    %68 = vector.shape_cast %67 : vector<1x16x8xbf16> to vector<16x8xbf16>
    %cst_29 = arith.constant dense<0.000000e+00> : vector<16x256xf32>
    %69 = tpu.matmul %68, %66, %cst_29 {dimension_numbers = #tpu.dot_dimension_numbers<[1], [0], [0], [1], [0, 0, 1, 1], [], []>} : vector<16x8xbf16>, vector<8x256xbf16>, vector<16x256xf32> -> vector<16x256xf32>
    %70 = arith.addf %62, %69 : vector<16x256xf32>
    %71 = vector.extract_strided_slice %4 {offsets = [0, 34], sizes = [8, 256], strides = [1, 1]} : vector<8x384xbf16> to vector<8x256xbf16>
    %72 = vector.extract_strided_slice %5 {offsets = [2, 0], sizes = [1, 256], strides = [1, 1]} : vector<3x256xbf16> to vector<1x256xbf16>
    %73 = vector.broadcast %72 : vector<1x256xbf16> to vector<8x256xbf16>
    %74 = arith.mulf %71, %73 : vector<8x256xbf16>
    %c8 = arith.constant 8 : index
    %c0_30 = arith.constant 0 : index
    %c0_31 = arith.constant 0 : index
    %75 = vector.load %arg3[%c8, %c0_30, %c0_31] : memref<9x16x8xbf16, #tpu.memory_space<vmem>>, vector<1x16x8xbf16>
    %76 = vector.shape_cast %75 : vector<1x16x8xbf16> to vector<16x8xbf16>
    %cst_32 = arith.constant dense<0.000000e+00> : vector<16x256xf32>
    %77 = tpu.matmul %76, %74, %cst_32 {dimension_numbers = #tpu.dot_dimension_numbers<[1], [0], [0], [1], [0, 0, 1, 1], [], []>} : vector<16x8xbf16>, vector<8x256xbf16>, vector<16x256xf32> -> vector<16x256xf32>
    %78 = arith.addf %70, %77 : vector<16x256xf32>
    %79 = arith.truncf %78 : vector<16x256xf32> to vector<16x256xbf16>
    %c0_33 = arith.constant 0 : index
    %c0_34 = arith.constant 0 : index
    %c0_35 = arith.constant 0 : index
    %80 = vector.load %arg5[%c0_33, %c0_34, %c0_35] : memref<1x16x256xbf16, #tpu.memory_space<vmem>>, vector<1x16x256xbf16>
    %81 = vector.shape_cast %80 : vector<1x16x256xbf16> to vector<16x256xbf16>
    %82 = vector.shape_cast %79 : vector<16x256xbf16> to vector<1x16x256xbf16>
    tpu.vector_store %arg5[%c0_33, %c0_34, %c0_35], %82 {strides = array<i32>} : memref<1x16x256xbf16, #tpu.memory_space<vmem>>, vector<1x16x256xbf16>,
    %c0_36 = arith.constant 0 : index
    %c0_37 = arith.constant 0 : index
    %c0_38 = arith.constant 0 : index
    %83 = vector.load %arg6[%c0_36, %c0_37, %c0_38] : memref<1x16x1xf32, #tpu.memory_space<vmem>>, vector<1x16x1xf32>
    %84 = vector.shape_cast %83 : vector<1x16x1xf32> to vector<16x1xf32>
    %cst_39 = arith.constant dense<0.000000e+00> : vector<16xf32>
    %85 = vector.multi_reduction <add>, %78, %cst_39 [1] : vector<16x256xf32> to vector<16xf32>
    %86 = vector.shape_cast %85 : vector<16xf32> to vector<16x1xf32>
    %87 = arith.addf %84, %86 : vector<16x1xf32>
    %c0_40 = arith.constant 0 : index
    %c0_41 = arith.constant 0 : index
    %c0_42 = arith.constant 0 : index
    %88 = vector.load %arg6[%c0_40, %c0_41, %c0_42] : memref<1x16x1xf32, #tpu.memory_space<vmem>>, vector<1x16x1xf32>
    %89 = vector.shape_cast %88 : vector<1x16x1xf32> to vector<16x1xf32>
    %90 = vector.shape_cast %87 : vector<16x1xf32> to vector<1x16x1xf32>
    tpu.vector_store %arg6[%c0_40, %c0_41, %c0_42], %90 {strides = array<i32>} : memref<1x16x1xf32, #tpu.memory_space<vmem>>, vector<1x16x1xf32>,
    %c0_43 = arith.constant 0 : index
    %c0_44 = arith.constant 0 : index
    %c0_45 = arith.constant 0 : index
    %91 = vector.load %arg7[%c0_43, %c0_44, %c0_45] : memref<1x16x1xf32, #tpu.memory_space<vmem>>, vector<1x16x1xf32>
    %92 = vector.shape_cast %91 : vector<1x16x1xf32> to vector<16x1xf32>
    %93 = arith.mulf %78, %78 : vector<16x256xf32>
    %cst_46 = arith.constant dense<0.000000e+00> : vector<16xf32>
    %94 = vector.multi_reduction <add>, %93, %cst_46 [1] : vector<16x256xf32> to vector<16xf32>
    %95 = vector.shape_cast %94 : vector<16xf32> to vector<16x1xf32>
    %96 = arith.addf %92, %95 : vector<16x1xf32>
    %c0_47 = arith.constant 0 : index
    %c0_48 = arith.constant 0 : index
    %c0_49 = arith.constant 0 : index
    %97 = vector.load %arg7[%c0_47, %c0_48, %c0_49] : memref<1x16x1xf32, #tpu.memory_space<vmem>>, vector<1x16x1xf32>
    %98 = vector.shape_cast %97 : vector<1x16x1xf32> to vector<16x1xf32>
    %99 = vector.shape_cast %96 : vector<16x1xf32> to vector<1x16x1xf32>
    tpu.vector_store %arg7[%c0_47, %c0_48, %c0_49], %99 {strides = array<i32>} : memref<1x16x1xf32, #tpu.memory_space<vmem>>, vector<1x16x1xf32>,
    return
  }
  func.func @transform_0(%arg0: i32, %arg1: i32) -> (i32, i32, i32) {
    %c2_i32 = arith.constant 2 : i32
    %0 = arith.muli %arg0, %c2_i32 : i32
    %1 = arith.addi %0, %arg1 : i32
    %c0_i32 = arith.constant 0 : i32
    %c0_i32_0 = arith.constant 0 : i32
    %c0_i32_1 = arith.constant 0 : i32
    return %1, %c0_i32, %c0_i32_0 : i32, i32, i32
  }
  func.func @transform_1(%arg0: i32, %arg1: i32) -> (i32, i32, i32) {
    %c0_i32 = arith.constant 0 : i32
    %c0_i32_0 = arith.constant 0 : i32
    %c0_i32_1 = arith.constant 0 : i32
    %c0_i32_2 = arith.constant 0 : i32
    return %c0_i32, %c0_i32_0, %c0_i32_1 : i32, i32, i32
  }
  func.func @transform_2(%arg0: i32, %arg1: i32) -> (i32, i32) {
    %c0_i32 = arith.constant 0 : i32
    %c0_i32_0 = arith.constant 0 : i32
    %c0_i32_1 = arith.constant 0 : i32
    return %c0_i32, %c0_i32_0 : i32, i32
  }
  func.func @transform_3(%arg0: i32, %arg1: i32) -> (i32, i32, i32) {
    %c2_i32 = arith.constant 2 : i32
    %0 = arith.muli %arg0, %c2_i32 : i32
    %1 = arith.addi %0, %arg1 : i32
    %c0_i32 = arith.constant 0 : i32
    %c0_i32_0 = arith.constant 0 : i32
    %c0_i32_1 = arith.constant 0 : i32
    return %1, %c0_i32, %c0_i32_0 : i32, i32, i32
  }
  func.func @transform_4(%arg0: i32, %arg1: i32) -> (i32, i32, i32) {
    %c0_i32 = arith.constant 0 : i32
    %c0_i32_0 = arith.constant 0 : i32
    %c0_i32_1 = arith.constant 0 : i32
    return %arg0, %c0_i32, %c0_i32_0 : i32, i32, i32
  }
  func.func @transform_5(%arg0: i32, %arg1: i32) -> (i32, i32, i32) {
    %c0_i32 = arith.constant 0 : i32
    %c0_i32_0 = arith.constant 0 : i32
    %c0_i32_1 = arith.constant 0 : i32
    return %arg0, %c0_i32, %c0_i32_0 : i32, i32, i32
  }
}

module attributes {stable_mosaic.version = 11 : i64} {
  func.func @_bn_apply_kernel(%arg0: i32, %arg1: memref<1x16x256xbf16, #tpu.memory_space<vmem>>, %arg2: memref<2x16x1xf32, #tpu.memory_space<vmem>>, %arg3: memref<2x16x1xf32, #tpu.memory_space<vmem>>, %arg4: memref<16x1xf32, #tpu.memory_space<vmem>>, %arg5: memref<16x1xf32, #tpu.memory_space<vmem>>, %arg6: memref<1x16x256xf32, #tpu.memory_space<vmem>>) attributes {dimension_semantics = [#tpu.dimension_semantics<parallel>], iteration_bounds = array<i64: 4>, scalar_prefetch = 0 : i64, scratch_operands = 0 : i64, tpu.core_type = #tpu.core_type<tc>, window_params = [{transform_indices = @transform_0, window_bounds = array<i64: 1, 16, 256>}, {pipeline_mode = #tpu.pipeline_mode<synchronous>, transform_indices = @transform_1, window_bounds = array<i64: 2, 16, 1>}, {pipeline_mode = #tpu.pipeline_mode<synchronous>, transform_indices = @transform_2, window_bounds = array<i64: 2, 16, 1>}, {pipeline_mode = #tpu.pipeline_mode<synchronous>, transform_indices = @transform_3, window_bounds = array<i64: 16, 1>}, {pipeline_mode = #tpu.pipeline_mode<synchronous>, transform_indices = @transform_4, window_bounds = array<i64: 16, 1>}, {transform_indices = @transform_5, window_bounds = array<i64: 1, 16, 256>}]} {
    %c0 = arith.constant 0 : index
    %c0_0 = arith.constant 0 : index
    %c0_1 = arith.constant 0 : index
    %0 = vector.load %arg2[%c0, %c0_0, %c0_1] : memref<2x16x1xf32, #tpu.memory_space<vmem>>, vector<2x16x1xf32>
    %cst = arith.constant dense<0.000000e+00> : vector<16x1xf32>
    %1 = vector.multi_reduction <add>, %0, %cst [0] : vector<2x16x1xf32> to vector<16x1xf32>
    %c0_2 = arith.constant 0 : index
    %c0_3 = arith.constant 0 : index
    %c0_4 = arith.constant 0 : index
    %2 = vector.load %arg3[%c0_2, %c0_3, %c0_4] : memref<2x16x1xf32, #tpu.memory_space<vmem>>, vector<2x16x1xf32>
    %cst_5 = arith.constant dense<0.000000e+00> : vector<16x1xf32>
    %3 = vector.multi_reduction <add>, %2, %cst_5 [0] : vector<2x16x1xf32> to vector<16x1xf32>
    %cst_6 = arith.constant 9.765625E-4 : f32
    %4 = vector.broadcast %cst_6 : f32 to vector<16x1xf32>
    %5 = arith.mulf %1, %4 : vector<16x1xf32>
    %cst_7 = arith.constant 9.765625E-4 : f32
    %6 = vector.broadcast %cst_7 : f32 to vector<16x1xf32>
    %7 = arith.mulf %3, %6 : vector<16x1xf32>
    %8 = arith.mulf %5, %5 : vector<16x1xf32>
    %9 = arith.subf %7, %8 : vector<16x1xf32>
    %cst_8 = arith.constant 0.000000e+00 : f32
    %10 = vector.broadcast %cst_8 : f32 to vector<16x1xf32>
    %11 = arith.maximumf %9, %10 : vector<16x1xf32>
    %cst_9 = arith.constant 9.99999974E-6 : f32
    %12 = vector.broadcast %cst_9 : f32 to vector<16x1xf32>
    %13 = arith.addf %11, %12 : vector<16x1xf32>
    %14 = math.rsqrt %13 : vector<16x1xf32>
    %c0_10 = arith.constant 0 : index
    %c0_11 = arith.constant 0 : index
    %15 = vector.load %arg4[%c0_10, %c0_11] : memref<16x1xf32, #tpu.memory_space<vmem>>, vector<16x1xf32>
    %16 = arith.mulf %15, %14 : vector<16x1xf32>
    %c0_12 = arith.constant 0 : index
    %c0_13 = arith.constant 0 : index
    %17 = vector.load %arg5[%c0_12, %c0_13] : memref<16x1xf32, #tpu.memory_space<vmem>>, vector<16x1xf32>
    %18 = arith.mulf %5, %16 : vector<16x1xf32>
    %19 = arith.subf %17, %18 : vector<16x1xf32>
    %c0_14 = arith.constant 0 : index
    %c0_15 = arith.constant 0 : index
    %c0_16 = arith.constant 0 : index
    %20 = vector.load %arg1[%c0_14, %c0_15, %c0_16] : memref<1x16x256xbf16, #tpu.memory_space<vmem>>, vector<1x16x256xbf16>
    %21 = vector.shape_cast %20 : vector<1x16x256xbf16> to vector<16x256xbf16>
    %22 = arith.extf %21 : vector<16x256xbf16> to vector<16x256xf32>
    %23 = vector.broadcast %16 : vector<16x1xf32> to vector<16x256xf32>
    %24 = arith.mulf %22, %23 : vector<16x256xf32>
    %25 = vector.broadcast %19 : vector<16x1xf32> to vector<16x256xf32>
    %26 = arith.addf %24, %25 : vector<16x256xf32>
    %c0_17 = arith.constant 0 : index
    %c0_18 = arith.constant 0 : index
    %c0_19 = arith.constant 0 : index
    %27 = vector.load %arg6[%c0_17, %c0_18, %c0_19] : memref<1x16x256xf32, #tpu.memory_space<vmem>>, vector<1x16x256xf32>
    %28 = vector.shape_cast %27 : vector<1x16x256xf32> to vector<16x256xf32>
    %29 = vector.shape_cast %26 : vector<16x256xf32> to vector<1x16x256xf32>
    tpu.vector_store %arg6[%c0_17, %c0_18, %c0_19], %29 {strides = array<i32>} : memref<1x16x256xf32, #tpu.memory_space<vmem>>, vector<1x16x256xf32>,
    return
  }
  func.func @transform_0(%arg0: i32) -> (i32, i32, i32) {
    %c0_i32 = arith.constant 0 : i32
    %c0_i32_0 = arith.constant 0 : i32
    %c0_i32_1 = arith.constant 0 : i32
    return %arg0, %c0_i32, %c0_i32_0 : i32, i32, i32
  }
  func.func @transform_1(%arg0: i32) -> (i32, i32, i32) {
    %c0_i32 = arith.constant 0 : i32
    %c0_i32_0 = arith.constant 0 : i32
    %c0_i32_1 = arith.constant 0 : i32
    %c0_i32_2 = arith.constant 0 : i32
    return %c0_i32, %c0_i32_0, %c0_i32_1 : i32, i32, i32
  }
  func.func @transform_2(%arg0: i32) -> (i32, i32, i32) {
    %c0_i32 = arith.constant 0 : i32
    %c0_i32_0 = arith.constant 0 : i32
    %c0_i32_1 = arith.constant 0 : i32
    %c0_i32_2 = arith.constant 0 : i32
    return %c0_i32, %c0_i32_0, %c0_i32_1 : i32, i32, i32
  }
  func.func @transform_3(%arg0: i32) -> (i32, i32) {
    %c0_i32 = arith.constant 0 : i32
    %c0_i32_0 = arith.constant 0 : i32
    %c0_i32_1 = arith.constant 0 : i32
    return %c0_i32, %c0_i32_0 : i32, i32
  }
  func.func @transform_4(%arg0: i32) -> (i32, i32) {
    %c0_i32 = arith.constant 0 : i32
    %c0_i32_0 = arith.constant 0 : i32
    %c0_i32_1 = arith.constant 0 : i32
    return %c0_i32, %c0_i32_0 : i32, i32
  }
  func.func @transform_5(%arg0: i32) -> (i32, i32, i32) {
    %c0_i32 = arith.constant 0 : i32
    %c0_i32_0 = arith.constant 0 : i32
    %c0_i32_1 = arith.constant 0 : i32
    return %arg0, %c0_i32, %c0_i32_0 : i32, i32, i32
  }
}

</mosaic_0001>

<bundles_post_ra>
// kernel: conv_block.3
= control target key start
LH: loop header
LB: loop body
LE: loop exit
PB: predicated region body
PF: predicated region fallthrough
CT: control target
= control target key end

     0   :  { %s430_s18 = smov 0   ;;  %s495_s0 = inlined_call_operand.vmem [shape: bf16[4,16,256], index: 0, kind: input, shape index: {}]   ;;  %s496_s1 = inlined_call_operand.vmem [shape: f32[2,16,1], index: 1, kind: input, shape index: {}]   ;;  %s497_s2 = inlined_call_operand.vmem [shape: f32[2,16,1], index: 2, kind: input, shape index: {}]   ;;  %s498_s3 = inlined_call_operand.vmem [shape: f32[16,1], index: 3, kind: input, shape index: {}]   ;;  %s499_s4 = inlined_call_operand.vmem [shape: f32[16,1], index: 4, kind: input, shape index: {}]   ;;  %s500_s5 = inlined_call_operand.vmem [shape: f32[4,16,256], index: 5, kind: output, shape index: {}]  }
   0x1 LB: > { %s363_s19 = sadd.s32 4294967295, %s397_s18   ;;  %p367_p0 = scmp.ge.s32.totalorder %s397_s18, 1  ;;  %s397_s18 = sphi %s430_s18, %s15_s18  }
   0x2   : > { %p187_p1 = scmp.lt.s32.totalorder %s397_s18, 5 }
   0x4   : > { %p188_p2 = pnand %p367_p0, %p187_p1 }
   0x5   : > { %v225_v0 = vld [vmem:[%s496_s1] sm:$0xff] (!%p188_p2)  ;;  %v227_v1 = vld [vmem:[%s496_s1 + $0x10] sm:$0xff] (!%p188_p2)  ;;  %vm229_vm0 = vcmask (!%p188_p2), 7168   ;;  %v399_v3 = vmov (!%p188_p2), 0   ;;  %v226_v8 = vld [vmem:[%s496_s1 + $0x8] sm:$0xff] (!%p188_p2)  ;;  %p215_p3 = scmp.lt.s32.totalorder (!%p188_p2), %s363_s19, 3 }
   0x6   : > { %191 = sbr.rel (%p188_p2) target bundleno = 171 (0xab), region = 40  ;;  %v236_v2 = vld [vmem:[%s497_s2] sm:$0xff] (!%p188_p2)  ;;  %385 = vset.pattern.permute.xlu0 (!%p188_p2), %v399_v3  ;;  %v230_v4 = vsel (!%p188_p2), %vm229_vm0, %v225_v0, 0.0  ;;  %v231_v5 = vsel (!%p188_p2), %vm229_vm0, %v227_v1, 0.0  ;;  %v238_v6 = vld [vmem:[%s497_s2 + $0x10] sm:$0xff] (!%p188_p2)  ;;  %386 = vset.pattern.permute.xlu1 (!%p188_p2), %v399_v3  ;;  %v228_v11 = vld [vmem:[%s496_s1 + $0x18] sm:$0xff] (!%p188_p2) }
   0x7   : > { %v240_v7 = vsel (!%p188_p2), %vm229_vm0, %v236_v2, 0.0  ;;  %v232_v9 = vadd.f32 (!%p188_p2), %v231_v5, %v230_v4  ;;  %v241_v10 = vsel (!%p188_p2), %vm229_vm0, %v238_v6, 0.0  ;;  %v233_v12 = vsel (!%p188_p2), %vm229_vm0, %v226_v8, 0.0  ;;  %v237_v13 = vld [vmem:[%s497_s2 + $0x8] sm:$0xff] (!%p188_p2)  ;;  %v239_v14 = vld [vmem:[%s497_s2 + $0x18] sm:$0xff] (!%p188_p2)  ;;  %v260_v33 = vld [vmem:[%s498_s3] sm:$0xff] (!%p188_p2) }
   0x8   : > { %v242_v15 = vadd.f32 (!%p188_p2), %v241_v10, %v240_v7  ;;  %v234_v16 = vsel (!%p188_p2), %vm229_vm0, %v228_v11, 0.0  ;;  %v243_v17 = vsel (!%p188_p2), %vm229_vm0, %v237_v13, 0.0  ;;  %v244_v18 = vsel (!%p188_p2), %vm229_vm0, %v239_v14, 0.0  ;;  %v261_v35 = vld [vmem:[%s498_s3 + $0x8] sm:$0xff] (!%p188_p2)  ;;  %v264_v38 = vld [vmem:[%s499_s4] sm:$0xff] (!%p188_p2) }
   0x9   : > { %v246_v19 = vmul.f32 (!%p188_p2), 0.0009765625, %v232_v9  ;;  %v235_v20 = vadd.f32 (!%p188_p2), %v234_v16, %v233_v12  ;;  %v245_v21 = vadd.f32 (!%p188_p2), %v244_v18, %v243_v17  ;;  %v265_v41 = vld [vmem:[%s499_s4 + $0x8] sm:$0xff] (!%p188_p2) }
   0xa   : > { %v248_v22 = vmul.f32 (!%p188_p2), 0.0009765625, %v242_v15 }
   0xb   : > { %v250_v23 = vmul.f32 (!%p188_p2), %v246_v19, %v246_v19  ;;  %v247_v24 = vmul.f32 (!%p188_p2), 0.0009765625, %v235_v20  ;;  %v249_v25 = vmul.f32 (!%p188_p2), 0.0009765625, %v245_v21 }
   0xd   : > { %v252_v26 = vsub.f32 %v248_v22, %v250_v23  ;;  %v251_v27 = vmul.f32 %v247_v24, %v247_v24  ;;  %s502_s19 = smov (!%p215_p3, %s363_s19), 3 }
   0xe   : > { %s374_s21 = sshll.u32 %s502_s19, 4  ;;  %s375_s25 = sshll.u32 %s502_s19, 5 }
   0xf   : > { %v254_v28 = vmax.f32 %v252_v26, 0.0  ;;  %v253_v29 = vsub.f32 %v249_v25, %v251_v27  ;;  %s219_s24 = scalar_lea.vmem %s495_s0, %s374_s21  ;;  %s224_s28 = scalar_lea.vmem %s500_s5, %s375_s25 }
  0x10   : > { %v270_v45 = vld [vmem:[%s219_s24] sm:$0xff]  ;;  %v271_v49 = vld [vmem:[%s219_s24 + $0x8] sm:$0xff] }
  0x11   : > { %v256_v30 = vadd.f32 1e-05, %v254_v28  ;;  %v255_v31 = vmax.f32 %v253_v29, 0.0  ;;  %v272_v46 = vunpack.c.l.bf16 %v270_v45  ;;  %v273_v47 = vunpack.c.h.bf16 %v270_v45 }
  0x12   : > { %v274_v52 = vunpack.c.l.bf16 %v271_v49  ;;  %v275_v53 = vunpack.c.h.bf16 %v271_v49 }
  0x13   : > { %387 = vrsqrt.f32 %v256_v30  ;;  %v257_v32 = vadd.f32 1e-05, %v255_v31 }
  0x15   : > { %389 = vrsqrt.f32 %v257_v32 }
  0x1d   : > { %v388_v34 = vpop.eup %387 }
  0x1e   : > { %v262_v36 = vmul.f32 %v388_v34, %v260_v33 }
  0x1f   : > { %v390_v37 = vpop.eup %389 }
  0x20   : > { %278 = vperm.xlu0 %385, %v262_v36   ;;  %v263_v39 = vmul.f32 %v390_v37, %v261_v35  ;;  %v266_v40 = vmul.f32 %v262_v36, %v246_v19 }
  0x22   : > { %v268_v42 = vsub.f32 %v264_v38, %v266_v40  ;;  %v267_v43 = vmul.f32 %v263_v39, %v247_v24 }
  0x24   : > { %283 = vperm.xlu0 %385, %v263_v39   ;;  %292 = vperm.xlu1 %386, %v268_v42   ;;  %v269_v44 = vsub.f32 %v265_v41, %v267_v43 }
  0x28   : > { %297 = vperm.xlu1 %386, %v269_v44  }
  0x9f   : > { %v279_v48 = vpop.permute.xlu0 %278 }
  0xa0   : > { %v286_v50 = vmul.f32 %v279_v48, %v272_v46  ;;  %v287_v51 = vmul.f32 %v279_v48, %v273_v47 }
  0xa3   : > { %v284_v54 = vpop.permute.xlu0 %283  ;;  %v293_v55 = vpop.permute.xlu1 %292 }
  0xa4   : > { %v300_v56 = vadd.f32 %v293_v55, %v286_v50  ;;  %v301_v57 = vadd.f32 %v293_v55, %v287_v51  ;;  %v288_v58 = vmul.f32 %v284_v54, %v274_v52  ;;  %v289_v59 = vmul.f32 %v284_v54, %v275_v53 }
  0xa6   : > { %304 = vst [vmem:[%s224_s28] sm:$0xff] %v300_v56  ;;  %305 = vst [vmem:[%s224_s28 + $0x8] sm:$0xff] %v301_v57 }
  0xa7   : > { %v298_v60 = vpop.permute.xlu1 %297 }
  0xa8   : > { %v302_v61 = vadd.f32 %v298_v60, %v288_v58  ;;  %v303_v62 = vadd.f32 %v298_v60, %v289_v59 }
  0xaa   : > { %306 = vst [vmem:[%s224_s28 + $0x10] sm:$0xff] %v302_v61  ;;  %307 = vst [vmem:[%s224_s28 + $0x18] sm:$0xff] %v303_v62 }
  0xab PF: > { %s15_s18 = sadd.s32 1, %s397_s18  }
  0xac   : > { %p12_p4 = scmp.ge.s32.totalorder %s15_s18, 6  }
  0xae   :  { %14 = sbr.rel (!%p12_p4) target bundleno = 1 (0x1), region = 70 }

// kernel: conv_block.2
= control target key start
LH: loop header
LB: loop body
LE: loop exit
PB: predicated region body
PF: predicated region fallthrough
CT: control target
= control target key end

     0   :  { %s1614_s18 = smov 0   ;;  %s1616_s19 = smov 0   ;;  %s1796_s0 = inlined_call_operand.vmem [shape: bf16[4,8,384], index: 0, kind: input, shape index: {}]   ;;  %s1797_s1 = inlined_call_operand.vmem [shape: bf16[9,16,8], index: 1, kind: input, shape index: {}]   ;;  %s1798_s2 = inlined_call_operand.vmem [shape: bf16[3,256], index: 2, kind: input, shape index: {}]   ;;  %s1799_s3 = inlined_call_operand.vmem [shape: bf16[4,16,256], index: 3, kind: output, shape index: {0}]   ;;  %s1800_s4 = inlined_call_operand.vmem [shape: f32[2,16,1], index: 4, kind: output, shape index: {1}]   ;;  %s1801_s5 = inlined_call_operand.vmem [shape: f32[2,16,1], index: 5, kind: output, shape index: {2}]  }
   0x1   :  { %s1618_s20 = smov 0   ;;  %s1620_s21 = smov 0  }
   0x2   :  { %s1622_s22 = smov 0  }
   0x3 LB: > { %s25_s23 = sadd.s32 1, %s1556_s20  ;;  %s28_s24 = sadd.s32 1, %s1560_s21  ;;  %s1564_s22 = sphi %s1622_s22, %s16_s22   ;;  %s1560_s21 = sphi %s1620_s21, %s1805_s21   ;;  %s1556_s20 = sphi %s1618_s20, %s1804_s20   ;;  %s1552_s19 = sphi %s1616_s19, %s1803_s19   ;;  %s1548_s18 = sphi %s1614_s18, %s1802_s18  }
   0x4   : > { %p26_p0 = scmp.ge.s32.totalorder %s25_s23, 2  ;;  %p1333_p1 = scmp.ge.s32.totalorder %s1564_s22, 1 }
   0x5   : > { %p216_p2 = scmp.lt.s32.totalorder %s1564_s22, 5 }
   0x6   : > { %s1807_s23 = smov (%p26_p0, %s25_s23), 0  ;;  %s1809_s24 = smov (!%p26_p0, %s28_s24), %s1560_s21 }
   0x7   : > { %p217_p3 = pnand %p1333_p1, %p216_p2  ;;  %p30_p4 = scmp.ge.s32.totalorder %s1809_s24, 2 }
   0x8   : > { %s1334_s25 = sshll.u32 (!%p217_p3), %s1552_s19, 1  ;;  %p276_p5 = scmp.lt.s32.totalorder (!%p217_p3), %s1552_s19, 1 }
   0x9   : > { %s1811_s24 = smov (%p30_p4, %s1809_s24), 0  ;;  %220 = sbr.rel (%p217_p3) target bundleno = 701 (0x2bd), region = 32 }
   0xa   : > { %s259_s26 = sadd.s32 (!%p217_p3), %s1548_s18, %s1334_s25  ;;  %p1343_p7 = scmp.ne.s32.totalorder (!%p217_p3), %s1548_s18, 0 }
   0xb   : > { %p260_p6 = scmp.lt.s32.totalorder (!%p217_p3), %s259_s26, 3 }
  0x10   : > { %s1813_s19 = smov (!%p276_p5, %s1552_s19), 1  ;;  %s1815_s26 = smov (!%p260_p6, %s259_s26), 3 }
  0x11   : > { %s1422_s27 = sshll.u32 %s1813_s19, 4  ;;  %s1458_s28 = smul.u32 12, %s1815_s26  ;;  %vm291_vm0 = vcmask (!%p1343_p7), 7168   ;;  %v1566_v0 = vmov (!%p1343_p7), 0.0  }
  0x12   : > { %s1421_s29 = sshll.u32 %s1815_s26, 4  ;;  %s1655_s10 = scalar_lea.vmem %s1800_s4, %s1422_s27 }
  0x13   : > { %s1650_s7 = scalar_lea.vmem %s1799_s3, %s1421_s29  ;;  %s1660_s13 = scalar_lea.vmem %s1796_s0, %s1458_s28  ;;  %292 = vst.msk [vmem:[%s1655_s10] sm:$0xff] (!%p1343_p7), %vm291_vm0, %v1566_v0  ;;  %293 = vst.msk [vmem:[%s1655_s10 + $0x8] sm:$0xff] (!%p1343_p7), %vm291_vm0, %v1566_v0 }
  0x14   : > { %s1665_s16 = scalar_lea.vmem %s1801_s5, %s1422_s27  ;;  %290 = sbr.rel (%p1343_p7) target bundleno = 27 (0x1b), region = 36 }
  0x15   : > { %294 = vst.msk [vmem:[%s1665_s16] sm:$0xff] (!%p1343_p7), %vm291_vm0, %v1566_v0  ;;  %295 = vst.msk [vmem:[%s1665_s16 + $0x8] sm:$0xff] (!%p1343_p7), %vm291_vm0, %v1566_v0 }
  0x1b PF: > { %v1344_v1 = vld.sshfl [vmem:[%s1798_s2] sm:$0x33 pattern:$0x76325410]  ;;  %v311_v2 = vlaneseq  ;;  %s1567_s18 = smov 18   ;;  %s1568_s25 = smov 17  }
  0x1c   : > { %v307_v3 = vcombine.high %v1344_v1, %v1344_v1  ;;  %v331_v4 = vshrl.u32 %v1344_v1, 16  ;;  %v309_v6 = vpack.i.b16 %v1344_v1, %v1344_v1  ;;  %s1569_s26 = smov 32   ;;  %s1570_s27 = smov 1   ;;  %vm696_vm1 = vcmask 138240   ;;  %v1680_v24 = vld [vmem:[%s1660_s13 + $0x8] sm:$0xf] }
  0x1d   : > { %v312_v5 = vshrl.u32 %v311_v2, 7  ;;  %s1571_s28 = smov 33   ;;  %s1572_s29 = smov 2   ;;  %v1683_v25 = vld [vmem:[%s1660_s13] sm:$0xff]  ;;  %v1575_v28 = vmov 0   ;;  %vm786_vm2 = vcmask 146432  }
  0x1e   : > { %v332_v7 = vpack.i.b16 %v331_v4, %v331_v4  ;;  %v338_v8 = vshrl.u32 %v307_v3, 16  ;;  %v316_v9 = vpack.i.b16 %v307_v3, %v307_v3  ;;  %s1573_s30 = smov 34   ;;  %s1574_s6 = smov 16   ;;  %768 = vmatprep.mubr.bf16.mxu0 %v1575_v28  ;;  %427 = vmatprep.mubr.bf16.mxu1 %v1575_v28  ;;  %vm353_vm3 = vcmask 7168  }
  0x1f   : > { %v313_v10 = vsub.s32 0, %v312_v5  ;;  %v502_v11 = vsub.s32 1, %v312_v5  ;;  %s1576_s8 = smov 111   ;;  %vm876_vm4 = vcmask 261120   ;;  %s1577_s9 = smov 127   ;;  %vm516_vm5 = vcmask 15360  }
  0x20   : > { %v339_v12 = vpack.i.b16 %v338_v8, %v338_v8  ;;  %s1578_s11 = smov 110   ;;  %s1579_s12 = smov 96   ;;  %vm966_vm6 = vcmask 269312   ;;  %vm606_vm7 = vcmask 130048   ;;  %vm1056_vm8 = vcmask 277504  }
  0x21   : > { %v337_v13 = vrot.slane %v332_v7, %v313_v10  ;;  %v503_v14 = vrot.slane %v309_v6, %v502_v11  ;;  %v507_v15 = vrot.slane %v316_v9, %v502_v11  ;;  %v314_v16 = vrot.slane %v309_v6, %v313_v10  ;;  %s1580_s13 = smov 126   ;;  %s1581_s14 = smov 95  }
  0x22   : > { %v344_v17 = vrot.slane %v339_v12, %v313_v10  ;;  %v321_v18 = vrot.slane %v316_v9, %v313_v10  ;;  %s1582_s15 = smov 112   ;;  %s1583_s17 = smov 94   ;;  %vm724_vm9 = vcmask 908288   ;;  %vm388_vm10 = vcmask 1043456  }
  0x23   : > { %v1360_v19 = vcombine.low %v503_v14, %v507_v15  ;;  %vm384_vm11 = vcmask 64512   ;;  %vm381_vm12 = vcmask 1039360   ;;  %vm814_vm13 = vcmask 900096  }
  0x24   : > { %v1346_v20 = vcombine.low %v337_v13, %v344_v17  ;;  %v1675_v21 = vcombine.low %v314_v16, %v321_v18  ;;  %vm904_vm14 = vcmask 785408   ;;  %vm544_vm15 = vcmask 1031168  }
  0x25   : > { %783 = vrot.lane.b32.xlu1 %v1360_v19, %s1567_s18  ;;  %vm994_vm0 = vcmask 777216  }
  0x26   : > { %693 = vrot.lane.b32.xlu0 %v1346_v20, %s1568_s25 }
  0x29   : > { %873 = vrot.lane.b32.xlu1 %v1675_v21, %s1569_s26 }
  0x2a   : > { %350 = vrot.lane.b32.xlu0 %v1346_v20, %s1570_s27 }
  0x2d   : > { %963 = vrot.lane.b32.xlu1 %v1346_v20, %s1571_s28 }
  0x2e   : > { %513 = vrot.lane.b32.xlu0 %v1360_v19, %s1572_s29 }
  0x31   : > { %1053 = vrot.lane.b32.xlu1 %v1360_v19, %s1573_s30 }
  0x32   : > { %603 = vrot.lane.b32.xlu0 %v1675_v21, %s1574_s6 }
  0x97   : > { %v784_v22 = vpop.permute.xlu1 %783 }
  0x98   : > { %v694_v23 = vpop.permute.xlu0 %693  ;;  %v785_v27 = vrot.slane %v784_v22, 4 }
  0x99   : > { %v695_v26 = vrot.slane %v694_v23, 4 }
  0x9a   : > { %v787_v35 = vsel %vm786_vm2, %v785_v27, %v784_v22  ;;  %v791_v51 = vmul.bf16 %v785_v27, %v1680_v24  ;;  %vm1084_vm2 = vcmask 769024  }
  0x9b   : > { %v697_v29 = vsel %vm696_vm1, %v695_v26, %v694_v23  ;;  %v701_v30 = vmul.bf16 %v695_v26, %v1680_v24  ;;  %v874_v37 = vpop.permute.xlu1 %873  ;;  %v790_v40 = vmul.bf16 %v787_v35, %v1683_v25  ;;  %v1517_v35 = vld [vmem:[%s1797_s1 + $0x20] sm:$0xff]   ;;  %vm634_vm1 = vcmask 916480  }
  0x9c   : > { %v700_v31 = vmul.bf16 %v697_v29, %v1683_v25  ;;  %v351_v32 = vpop.permute.xlu0 %350  ;;  %v875_v43 = vrot.slane %v874_v37, 4  ;;  %v1390_v57 = vcombine.low %v791_v51, %v791_v51  ;;  %v1519_v51 = vld [vmem:[%s1797_s1 + $0x28] sm:$0xff]  }
  0x9d   : > { %v352_v33 = vrot.slane %v351_v32, 4  ;;  %v1382_v34 = vcombine.low %v701_v30, %v701_v30  ;;  %v1388_v45 = vcombine.low %v790_v40, %v790_v40  ;;  %v1389_v53 = vcombine.high %v790_v40, %v790_v40 }
  0x9e   : > { %v1381_v36 = vcombine.high %v700_v31, %v700_v31  ;;  %v1380_v41 = vcombine.low %v700_v31, %v700_v31  ;;  %v877_v46 = vsel %vm876_vm4, %v875_v43, %v874_v37  ;;  %v881_v54 = vmul.bf16 %v875_v43, %v1680_v24 }
  0x9f   : > { %v354_v38 = vsel %vm353_vm3, %v352_v33, %v351_v32  ;;  %v358_v39 = vmul.bf16 %v352_v33, %v1680_v24  ;;  %722 = vrot.lane.b32.xlu0 %v1382_v34, %s1576_s8  ;;  %v880_v49 = vmul.bf16 %v877_v46, %v1683_v25  ;;  %v964_v58 = vpop.permute.xlu1 %963 }
  0xa0   : > { %720 = vrot.lane.b32.xlu1 %v1381_v36, %s1576_s8  ;;  %v357_v44 = vmul.bf16 %v354_v38, %v1683_v25  ;;  %v514_v47 = vpop.permute.xlu0 %513  ;;  %v1398_v61 = vcombine.low %v881_v54, %v881_v54  ;;  %v965_v62 = vrot.slane %v964_v58, 4  ;;  %v328_v36 = vmul.bf16 %v1675_v21, %v1683_v25  ;;  %v1518_v21 = vld [vmem:[%s1797_s1 + $0x8] sm:$0xff]  }
  0xa1   : > { %v1352_v42 = vcombine.low %v358_v39, %v358_v39  ;;  %v515_v50 = vrot.slane %v514_v47, 4  ;;  %v1396_v56 = vcombine.low %v880_v49, %v880_v49  ;;  %v1397_v60 = vcombine.high %v880_v49, %v880_v49 }
  0xa2   : > { %v1350_v48 = vcombine.low %v357_v44, %v357_v44  ;;  %v1351_v52 = vcombine.high %v357_v44, %v357_v44  ;;  %v967_v2 = vsel %vm966_vm6, %v965_v62, %v964_v58  ;;  %v971_v3 = vmul.bf16 %v965_v62, %v1680_v24 }
  0xa3   : > { %718 = vrot.lane.b32.xlu0 %v1380_v41, %s1576_s8  ;;  %v517_v55 = vsel %vm516_vm5, %v515_v50, %v514_v47  ;;  %v521_v0 = vmul.bf16 %v515_v50, %v1680_v24  ;;  %v1054_v6 = vpop.permute.xlu1 %1053  ;;  %v970_v7 = vmul.bf16 %v967_v2, %v1683_v25  ;;  %v1357_v40 = vcombine.high %v328_v36, %v328_v36 }
  0xa4   : > { %379 = vrot.lane.b32.xlu1 %v1352_v42, %s1577_s9  ;;  %v520_v59 = vmul.bf16 %v517_v55, %v1683_v25  ;;  %v604_v63 = vpop.permute.xlu0 %603  ;;  %v1406_v10 = vcombine.low %v971_v3, %v971_v3  ;;  %v1055_v11 = vrot.slane %v1054_v6, 4  ;;  %v1356_v41 = vcombine.low %v328_v36, %v328_v36 }
  0xa5   : > { %v605_v5 = vrot.slane %v604_v63, 4  ;;  %v1366_v8 = vcombine.low %v521_v0, %v521_v0  ;;  %v1405_v13 = vcombine.high %v970_v7, %v970_v7  ;;  %v1404_v14 = vcombine.low %v970_v7, %v970_v7 }
  0xa6   : > { %v1364_v1 = vcombine.low %v520_v59, %v520_v59  ;;  %v1365_v4 = vcombine.high %v520_v59, %v520_v59  ;;  %v1057_v15 = vsel %vm1056_vm8, %v1055_v11, %v1054_v6  ;;  %v1061_v22 = vmul.bf16 %v1055_v11, %v1680_v24 }
  0xa7   : > { %808 = vrot.lane.b32.xlu0 %v1388_v45, %s1578_s11  ;;  %v607_v9 = vsel %vm606_vm7, %v605_v5, %v604_v63  ;;  %v611_v16 = vmul.bf16 %v605_v5, %v1680_v24  ;;  %v1060_v18 = vmul.bf16 %v1057_v15, %v1683_v25  ;;  %v452_v47 = vsel %vm388_vm10, %v1356_v41, 0  ;;  %v1523_v15 = vld [vmem:[%s1797_s1 + $0x38] sm:$0xff]  }
  0xa8   : > { %375 = vrot.lane.b32.xlu1 %v1350_v48, %s1577_s9  ;;  %v610_v12 = vmul.bf16 %v607_v9, %v1683_v25  ;;  %v1414_v27 = vcombine.low %v1061_v22, %v1061_v22  ;;  %v1524_v22 = vld [vmem:[%s1797_s1 + $0x18] sm:$0xff]  }
  0xa9   : > { %v1374_v20 = vcombine.low %v611_v16, %v611_v16  ;;  %v1412_v23 = vcombine.low %v1060_v18, %v1060_v18  ;;  %v1413_v26 = vcombine.high %v1060_v18, %v1060_v18 }
  0xaa   : > { %v1372_v17 = vcombine.low %v610_v12, %v610_v12  ;;  %v1373_v19 = vcombine.high %v610_v12, %v610_v12 }
  0xab   : > { %377 = vrot.lane.b32.xlu0 %v1351_v52, %s1577_s9 }
  0xac   : > { %810 = vrot.lane.b32.xlu1 %v1389_v53, %s1578_s11 }
  0xaf   : > { %812 = vrot.lane.b32.xlu0 %v1390_v57, %s1578_s11 }
  0xb0   : > { %898 = vrot.lane.b32.xlu1 %v1396_v56, %s1579_s12 }
  0xb3   : > { %900 = vrot.lane.b32.xlu0 %v1397_v60, %s1579_s12  ;;  %v1520_v60 = vld [vmem:[%s1797_s1] sm:$0xff]  }
  0xb4   : > { %902 = vrot.lane.b32.xlu1 %v1398_v61, %s1579_s12 }
  0xb7   : > { %538 = vrot.lane.b32.xlu0 %v1364_v1, %s1580_s13  ;;  %v1521_v1 = vld [vmem:[%s1797_s1 + $0x30] sm:$0xff]  }
  0xb8   : > { %540 = vrot.lane.b32.xlu1 %v1365_v4, %s1580_s13 }
  0xbb   : > { %542 = vrot.lane.b32.xlu0 %v1366_v8, %s1580_s13 }
  0xbc   : > { %992 = vrot.lane.b32.xlu1 %v1406_v10, %s1581_s14  ;;  %v1522_v10 = vld [vmem:[%s1797_s1 + $0x10] sm:$0xff]  }
  0xbf   : > { %990 = vrot.lane.b32.xlu0 %v1405_v13, %s1581_s14 }
  0xc0   : > { %988 = vrot.lane.b32.xlu1 %v1404_v14, %s1581_s14 }
  0xc3   : > { %628 = vrot.lane.b32.xlu0 %v1372_v17, %s1582_s15 }
  0xc4   : > { %630 = vrot.lane.b32.xlu1 %v1373_v19, %s1582_s15 }
  0xc7   : > { %632 = vrot.lane.b32.xlu0 %v1374_v20, %s1582_s15 }
  0xc8   : > { %1078 = vrot.lane.b32.xlu1 %v1412_v23, %s1583_s17  ;;  %v1525_v23 = vld [vmem:[%s1797_s1 + $0x40] sm:$0xff]  }
  0xcb   : > { %1080 = vrot.lane.b32.xlu0 %v1413_v26, %s1583_s17 }
  0xcc   : > { %1082 = vrot.lane.b32.xlu1 %v1414_v27, %s1583_s17 }
 0x111   : > { %v723_v29 = vpop.permute.xlu0 %722 }
 0x112   : > { %v721_v30 = vpop.permute.xlu1 %720 }
 0x113   : > { %v726_v31 = vsel %vm724_vm9, %v721_v30, %v723_v29 }
 0x114   : > { %1383 = vmatprep.subr.msk.bf16.mxu0 %vm388_vm10, %v726_v31 }
 0x115   : > { %v719_v32 = vpop.permute.xlu0 %718 }
 0x116   : > { %v380_v33 = vpop.permute.xlu1 %379  ;;  %v725_v34 = vsel %vm724_vm9, %v719_v32, %v721_v30 }
 0x117   : > { %v731_v24 = vsel %vm388_vm10, %v725_v34, 0 }
 0x118   : > { %737 = vmatpush1.bf16.msra.mxu0 %v731_v24 }
 0x119   : > { %v809_v37 = vpop.permute.xlu0 %808 }
 0x11a   : > { %v376_v38 = vpop.permute.xlu1 %375 }
 0x11b   : > { %1384 = vmatmul.mubr.msk.bf16.vlgmr.msra.gmra.mrb[0].mxu0 %vm384_vm11, %v1517_v35 }
 0x11c   : > { %858 = vmatprep.mubr.bf16.mxu0 %v1575_v28 }
 0x11d   : > { %v378_v39 = vpop.permute.xlu0 %377 }
 0x11e   : > { %v811_v42 = vpop.permute.xlu1 %810  ;;  %v383_v43 = vsel %vm381_vm12, %v378_v39, %v380_v33  ;;  %v382_v44 = vsel %vm381_vm12, %v376_v38, %v378_v39 }
 0x11f   : > { %1353 = vmatprep.subr.msk.bf16.mxu1 %vm388_vm10, %v383_v43  ;;  %v390_v45 = vsel %vm388_vm10, %v382_v44, 0  ;;  %v815_v25 = vsel %vm814_vm13, %v809_v37, %v811_v42 }
 0x120   : > { %396 = vmatpush1.bf16.msra.mxu1 %v390_v45  ;;  %v821_v50 = vsel %vm388_vm10, %v815_v25, 0  ;;  %v1157_v25 = vld [vmem:[%s1655_s10] sm:$0xff] }
 0x121   : > { %v813_v46 = vpop.permute.xlu0 %812  ;;  %1358 = vmatprep.subr.msk.bf16.mxu1 %vm388_vm10, %v1357_v40 }
 0x122   : > { %v816_v48 = vsel %vm814_vm13, %v811_v42, %v813_v46  ;;  %v899_v49 = vpop.permute.xlu1 %898 }
 0x123   : > { %1354 = vmatmul.mubr.msk.bf16.vlgmr.msra.gmra.mrb[0].mxu1 %vm384_vm11, %v1518_v21  ;;  %1391 = vmatprep.subr.msk.bf16.mxu0 %vm388_vm10, %v816_v48 }
 0x124   : > { %827 = vmatpush1.bf16.msra.mxu0 %v821_v50  ;;  %458 = vmatpush1.bf16.msra.mxu1 %v452_v47  ;;  %v1158_v47 = vld [vmem:[%s1655_s10 + $0x8] sm:$0xff]  ;;  %v1170_v50 = vld [vmem:[%s1665_s16] sm:$0xff] }
 0x125   : > { %v901_v52 = vpop.permute.xlu0 %900  ;;  %489 = vmatprep.mubr.bf16.mxu1 %v1575_v28 }
 0x126   : > { %v905_v53 = vsel %vm904_vm14, %v899_v49, %v901_v52  ;;  %v903_v54 = vpop.permute.xlu1 %902 }
 0x127   : > { %v911_v55 = vsel %vm388_vm10, %v905_v53, 0  ;;  %1392 = vmatmul.mubr.msk.bf16.vlgmr.msra.gmra.mrb[0].mxu0 %vm384_vm11, %v1519_v51  ;;  %v906_v56 = vsel %vm904_vm14, %v901_v52, %v903_v54  ;;  %v1171_v54 = vld [vmem:[%s1665_s16 + $0x8] sm:$0xff] }
 0x128   : > { %1399 = vmatprep.subr.msk.bf16.mxu0 %vm388_vm10, %v906_v56  ;;  %948 = vmatprep.mubr.bf16.mxu0 %v1575_v28 }
 0x129   : > { %917 = vmatpush1.bf16.msra.mxu0 %v911_v55  ;;  %v539_v57 = vpop.permute.xlu0 %538 }
 0x12a   : > { %v541_v58 = vpop.permute.xlu1 %540 }
 0x12b   : > { %v545_v59 = vsel %vm544_vm15, %v539_v57, %v541_v58 }
 0x12c   : > { %v551_v61 = vsel %vm388_vm10, %v545_v59, 0 }
 0x12d   : > { %v543_v62 = vpop.permute.xlu0 %542 }
 0x12e   : > { %v546_v63 = vsel %vm544_vm15, %v541_v58, %v543_v62  ;;  %v993_v0 = vpop.permute.xlu1 %992 }
 0x12f   : > { %1359 = vmatmul.mubr.msk.bf16.vlgmr.msra.gmra.mrb[0].mxu1 %vm384_vm11, %v1520_v60  ;;  %1367 = vmatprep.subr.msk.bf16.mxu1 %vm388_vm10, %v546_v63 }
 0x130   : > { %557 = vmatpush1.bf16.msra.mxu1 %v551_v61  ;;  %588 = vmatprep.mubr.bf16.mxu1 %v1575_v28 }
 0x131   : > { %v991_v2 = vpop.permute.xlu0 %990 }
 0x132   : > { %v996_v3 = vsel %vm994_vm0, %v991_v2, %v993_v0  ;;  %v989_v4 = vpop.permute.xlu1 %988 }
 0x133   : > { %1400 = vmatmul.mubr.msk.bf16.vlgmr.msra.gmra.mrb[0].mxu0 %vm384_vm11, %v1521_v1  ;;  %v995_v5 = vsel %vm994_vm0, %v989_v4, %v991_v2  ;;  %1407 = vmatprep.subr.msk.bf16.mxu0 %vm388_vm10, %v996_v3 }
 0x134   : > { %v1001_v6 = vsel %vm388_vm10, %v995_v5, 0  ;;  %1038 = vmatprep.mubr.bf16.mxu0 %v1575_v28 }
 0x135   : > { %v629_v7 = vpop.permute.xlu0 %628  ;;  %1007 = vmatpush1.bf16.msra.mxu0 %v1001_v6 }
 0x136   : > { %v631_v8 = vpop.permute.xlu1 %630 }
 0x137   : > { %v635_v9 = vsel %vm634_vm1, %v629_v7, %v631_v8 }
 0x138   : > { %v641_v11 = vsel %vm388_vm10, %v635_v9, 0 }
 0x139   : > { %v633_v12 = vpop.permute.xlu0 %632 }
 0x13a   : > { %v636_v13 = vsel %vm634_vm1, %v631_v8, %v633_v12  ;;  %v1079_v14 = vpop.permute.xlu1 %1078 }
 0x13b   : > { %1368 = vmatmul.mubr.msk.bf16.vlgmr.msra.gmra.mrb[0].mxu1 %vm384_vm11, %v1522_v10  ;;  %1375 = vmatprep.subr.msk.bf16.mxu1 %vm388_vm10, %v636_v13 }
 0x13c   : > { %647 = vmatpush1.bf16.msra.mxu1 %v641_v11  ;;  %678 = vmatprep.mubr.bf16.mxu1 %v1575_v28 }
 0x13d   : > { %v1081_v16 = vpop.permute.xlu0 %1080 }
 0x13e   : > { %v1085_v17 = vsel %vm1084_vm2, %v1079_v14, %v1081_v16  ;;  %v1083_v18 = vpop.permute.xlu1 %1082 }
 0x13f   : > { %v1091_v19 = vsel %vm388_vm10, %v1085_v17, 0  ;;  %1408 = vmatmul.mubr.msk.bf16.vlgmr.msra.gmra.mrb[0].mxu0 %vm384_vm11, %v1523_v15  ;;  %v1086_v20 = vsel %vm1084_vm2, %v1081_v16, %v1083_v18 }
 0x140   : > { %1415 = vmatprep.subr.msk.bf16.mxu0 %vm388_vm10, %v1086_v20  ;;  %1128 = vmatprep.mubr.bf16.mxu0 %v1575_v28 }
 0x141   : > { %1097 = vmatpush1.bf16.msra.mxu0 %v1091_v19 }
 0x147   : > { %1376 = vmatmul.mubr.msk.bf16.vlgmr.msra.gmra.mrb[0].mxu1 %vm384_vm11, %v1524_v22 }
 0x14b   : > { %1416 = vmatmul.mubr.msk.bf16.vlgmr.msra.gmra.mrb[0].mxu0 %vm384_vm11, %v1525_v23 }
 0x21a   : > { %v680_v26 = vpop.f32.mrb[0].mxu1 }
 0x21b   : > { %v682_v27 = vpop.f32.mrb[1].mxu1 }
 0x21c   : > { %v684_v29 = vpop.f32.mrb[2].mxu1 }
 0x21d   : > { %v686_v30 = vpop.f32.mrb[3].mxu1 }
 0x21e   : > { %v1130_v31 = vpop.f32.mrb[0].mxu0 }
 0x21f   : > { %v1426_v28 = vadd.f32 %v1130_v31, %v680_v26  ;;  %v1132_v32 = vpop.f32.mrb[1].mxu0 }
 0x220   : > { %v1427_v33 = vadd.f32 %v1132_v32, %v682_v27  ;;  %v1134_v34 = vpop.f32.mrb[2].mxu0 }
 0x221   : > { %v1428_v24 = vadd.f32 %v1134_v34, %v684_v29  ;;  %v1136_v35 = vpop.f32.mrb[3].mxu0  ;;  %v1172_v36 = vmul.f32 %v1426_v28, %v1426_v28 }
 0x222   : > { %v1424_v37 = vpack.c.bf16 %v1427_v33, %v1426_v28  ;;  %v1429_v38 = vadd.f32 %v1136_v35, %v686_v30  ;;  %v1159_v39 = vadd.f32 %v1427_v33, %v1426_v28  ;;  %v1173_v40 = vmul.f32 %v1427_v33, %v1427_v33 }
 0x223   : > { %v1174_v41 = vmul.f32 %v1428_v24, %v1428_v24 }
 0x224   : > { %1155 = vst [vmem:[%s1650_s7] sm:$0xff] %v1424_v37  ;;  %v1425_v42 = vpack.c.bf16 %v1429_v38, %v1428_v24  ;;  %1160 = vadd.xlane.f32.xlu0 %v1159_v39  ;;  %v1162_v43 = vadd.f32 %v1429_v38, %v1428_v24  ;;  %v1176_v44 = vadd.f32 %v1173_v40, %v1172_v36 }
 0x225   : > { %v1175_v45 = vmul.f32 %v1429_v38, %v1429_v38 }
 0x226   : > { %1156 = vst [vmem:[%s1650_s7 + $0x8] sm:$0xff] %v1425_v42  ;;  %1163 = vadd.xlane.f32.xlu1 %v1162_v43 }
 0x227   : > { %v1179_v21 = vadd.f32 %v1175_v45, %v1174_v41 }
 0x228   : > { %1177 = vadd.xlane.f32.xlu0 %v1176_v44 }
 0x22c   : > { %1180 = vadd.xlane.f32.xlu0 %v1179_v21 }
 0x2b1   : > { %v1161_v46 = vpop.xlane.xlu0 %1160 }
 0x2b2   : > { %v1165_v48 = vadd.f32 %v1161_v46, %v1157_v25 }
 0x2b3   : > { %v1164_v49 = vpop.xlane.xlu1 %1163 }
 0x2b4   : > { %1168 = vst.msk [vmem:[%s1655_s10] sm:$0xff] %vm353_vm3, %v1165_v48  ;;  %v1166_v51 = vadd.f32 %v1164_v49, %v1158_v47 }
 0x2b5   : > { %v1178_v52 = vpop.xlane.xlu0 %1177 }
 0x2b6   : > { %1169 = vst.msk [vmem:[%s1655_s10 + $0x8] sm:$0xff] %vm353_vm3, %v1166_v51  ;;  %v1182_v53 = vadd.f32 %v1178_v52, %v1170_v50 }
 0x2b8   : > { %1184 = vst.msk [vmem:[%s1665_s16] sm:$0xff] %vm353_vm3, %v1182_v53 }
 0x2b9   : > { %v1181_v55 = vpop.xlane.xlu0 %1180 }
 0x2ba   : > { %v1183_v56 = vadd.f32 %v1181_v55, %v1171_v54 }
 0x2bc   : > { %1185 = vst.msk [vmem:[%s1665_s16 + $0x8] sm:$0xff] %vm353_vm3, %v1183_v56 }
 0x2bd PF: > { %s16_s22 = sadd.s32 1, %s1564_s22   ;;  %s1802_s18 = smov %s1556_s20 }
 0x2be   : > { %p13_p8 = scmp.ge.s32.totalorder %s16_s22, 6   ;;  %s1803_s19 = smov %s1560_s21 }
 0x2bf   : > { %s1804_s20 = smov %s1807_s23  ;;  %s1805_s21 = smov %s1811_s24 }
 0x2c0   :  { %15 = sbr.rel (!%p13_p8) target bundleno = 3 (0x3), region = 98 }

</bundles_post_ra>
